<compile_context>
chip_gen: v5e
topology: v5e:2x2
jax: 0.10.0
libtpu: 0.0.40
codegen_flags: <defaults>
</compile_context>

<pallas_src>
import functools

import jax
import jax.numpy as jnp
from jax.experimental import pallas as pl
from jax.experimental.pallas import tpu as pltpu


def _round_up(n, m):
    return ((n + m - 1) // m) * m


def mlp_kernel(x_ref, w1_ref, b1_ref, w2_ref, b2_ref, o_ref, *, split_len):
    x = x_ref[...]
    # fc1 + ReLU (MXU matmul, f32 accumulate; bias/ReLU in f32 on the VPU)
    h = jnp.dot(x, w1_ref[...], preferred_element_type=jnp.float32) + b1_ref[...]
    h = jnp.maximum(h, 0.0)
    # fc2: one fused matmul against the channel-blocked weight (hidden, 3*S).
    y = (jnp.dot(h.astype(w2_ref.dtype), w2_ref[...],
                 preferred_element_type=jnp.float32) + b2_ref[...])
    # Static lane slices: the three class-channel blocks.
    y0 = y[:, :split_len]
    y1 = y[:, split_len:2 * split_len]
    y2 = y[:, 2 * split_len:]
    # Numerically-stable softmax over the 3 class channels (exp on the EUP).
    m = jnp.maximum(jnp.maximum(y0, y1), y2)
    e0 = jnp.exp(y0 - m)
    e1 = jnp.exp(y1 - m)
    e2 = jnp.exp(y2 - m)
    # Exact reciprocal (NOT approx=True: the fast vrcp is only ~2^-9 accurate
    # and broke the 1e-4 numerics check).  One divide + three muls is cheap.
    inv = 1.0 / (e0 + e1 + e2)
    # One lane-dense store of the channel-blocked result [p0 | p1 | p2].
    o_ref[...] = jnp.concatenate([e0 * inv, e1 * inv, e2 * inv],
                                 axis=-1).astype(o_ref.dtype)


def mlp_forward(x, w1, b1, w2, b2, *, split_len, block_b=512, use_bf16=False):
    """Pallas forward.  x: (B, split_len*20) f32 -> (B, split_len*3) f32."""
    B, dim_in = x.shape
    hidden = w1.shape[1]
    feat_dim = w2.shape[1]
    assert feat_dim == split_len * 3

    # --- batch tile selection ------------------------------------------------
    # Multiple of 8 (sublane), never bigger than the (rounded-up) batch, and
    # prefer >=2 grid steps so the batch axis can be sharded across both
    # TensorCores on v7x.
    if block_b >= B and B > 8:
        block_b = _round_up(pl.cdiv(B, 2), 8)
    else:
        block_b = min(block_b, _round_up(B, 8))
    block_b = max(8, block_b)
    grid = (pl.cdiv(B, block_b),)

    # --- glue (plain JAX): channel-blocked fc2 params ------------------------
    # Columns 0::3 / 1::3 / 2::3 of the torch weight, concatenated, so the
    # per-group (size-3) softmax becomes plain elementwise work on three
    # (block_b, split_len) lane slices of one matmul result.
    w2_cat = jnp.concatenate([w2[:, 0::3], w2[:, 1::3], w2[:, 2::3]], axis=1)
    b2_cat = jnp.concatenate([b2[0::3], b2[1::3], b2[2::3]]).reshape(1, feat_dim)
    b1_2d = b1.reshape(1, hidden)

    if use_bf16:
        # bf16 MXU operands, f32 accumulate; biases / elementwise stay f32.
        x_in = x.astype(jnp.bfloat16)
        w1_in = w1.astype(jnp.bfloat16)
        w2_in = w2_cat.astype(jnp.bfloat16)
    else:
        x_in, w1_in, w2_in = x, w1, w2_cat

    full = lambda i: (0, 0)                                       # weights/biases
    xspec = pl.BlockSpec((block_b, dim_in), lambda i: (i, 0))     # tile over batch
    ospec = pl.BlockSpec((block_b, feat_dim), lambda i: (i, 0))   # lane-dense out

    cost = pl.CostEstimate(
        flops=2 * B * (dim_in * hidden + hidden * feat_dim),
        transcendentals=3 * B * split_len,
        bytes_accessed=4 * (B * (dim_in + feat_dim)
                            + dim_in * hidden + hidden * feat_dim
                            + hidden + feat_dim),
    )

    out_blocked = pl.pallas_call(
        functools.partial(mlp_kernel, split_len=split_len),
        grid=grid,
        in_specs=[
            xspec,
            pl.BlockSpec((dim_in, hidden), full),
            pl.BlockSpec((1, hidden), full),
            pl.BlockSpec((hidden, feat_dim), full),
            pl.BlockSpec((1, feat_dim), full),
        ],
        out_specs=ospec,
        out_shape=jax.ShapeDtypeStruct((B, feat_dim), jnp.float32),
        compiler_params=pltpu.CompilerParams(
            dimension_semantics=("parallel",)),
        cost_estimate=cost,
    )(x_in, w1_in, b1_2d, w2_in, b2_cat)

    # Glue (plain JAX): un-block the channels back to torch's interleaved
    # layout  softmax(h.view(-1, split_len, 3)).view(-1, split_len*3).
    return (out_blocked.reshape(B, 3, split_len)
            .transpose(0, 2, 1)
            .reshape(B, split_len * 3))


if __name__ == "__main__":
    # Module-default shapes (split_len=20 -> dim_in=400, feat_dim=60), small batch.
    split_len, hidden, batch = 20, 64, 64
    dim_in, feat_dim = split_len * 20, split_len * 3

    key = jax.random.PRNGKey(0)
    kx, k1, k2, k3, k4 = jax.random.split(key, 5)
    x = jax.random.normal(kx, (batch, dim_in), dtype=jnp.float32)

    # Deterministic params, PyTorch-Linear-style uniform(+-1/sqrt(fan_in)) init.
    bnd1 = 1.0 / (dim_in ** 0.5)
    w1 = jax.random.uniform(k1, (dim_in, hidden), minval=-bnd1, maxval=bnd1, dtype=jnp.float32)
    b1 = jax.random.uniform(k2, (hidden,), minval=-bnd1, maxval=bnd1, dtype=jnp.float32)
    bnd2 = 1.0 / (hidden ** 0.5)
    w2 = jax.random.uniform(k3, (hidden, feat_dim), minval=-bnd2, maxval=bnd2, dtype=jnp.float32)
    b2 = jax.random.uniform(k4, (feat_dim,), minval=-bnd2, maxval=bnd2, dtype=jnp.float32)

    out = mlp_forward(x, w1, b1, w2, b2, split_len=split_len)
    out = jax.block_until_ready(out)

    # Pure-JAX reference of the torch forward.
    h = jnp.maximum(x @ w1 + b1, 0.0)
    y = h @ w2 + b2
    ref = jax.nn.softmax(y.reshape(batch, split_len, 3), axis=-1).reshape(batch, feat_dim)

    assert out.shape == (batch, feat_dim), out.shape
    err = float(jnp.max(jnp.abs(out - ref)))
    assert jnp.allclose(out, ref, atol=2e-4, rtol=2e-4), err
    print("KERNEL_OK")
</pallas_src>

<mosaic_0001>
module attributes {stable_mosaic.version = 11 : i64} {
  func.func @mlp_kernel(%arg0: i32, %arg1: memref<32x400xf32, #tpu.memory_space<vmem>>, %arg2: memref<400x64xf32, #tpu.memory_space<vmem>>, %arg3: memref<1x64xf32, #tpu.memory_space<vmem>>, %arg4: memref<64x60xf32, #tpu.memory_space<vmem>>, %arg5: memref<1x60xf32, #tpu.memory_space<vmem>>, %arg6: memref<32x60xf32, #tpu.memory_space<vmem>>) attributes {dimension_semantics = [#tpu.dimension_semantics<parallel>], iteration_bounds = array<i64: 2>, scalar_prefetch = 0 : i64, scratch_operands = 0 : i64, tpu.core_type = #tpu.core_type<tc>, window_params = [{transform_indices = @transform_0, window_bounds = array<i64: 32, 400>}, {pipeline_mode = #tpu.pipeline_mode<synchronous>, transform_indices = @transform_1, window_bounds = array<i64: 400, 64>}, {pipeline_mode = #tpu.pipeline_mode<synchronous>, transform_indices = @transform_2, window_bounds = array<i64: 1, 64>}, {pipeline_mode = #tpu.pipeline_mode<synchronous>, transform_indices = @transform_3, window_bounds = array<i64: 64, 60>}, {pipeline_mode = #tpu.pipeline_mode<synchronous>, transform_indices = @transform_4, window_bounds = array<i64: 1, 60>}, {transform_indices = @transform_5, window_bounds = array<i64: 32, 60>}]} {
    %c0 = arith.constant 0 : index
    %c0_0 = arith.constant 0 : index
    %0 = vector.load %arg1[%c0, %c0_0] : memref<32x400xf32, #tpu.memory_space<vmem>>, vector<32x400xf32>
    %c0_1 = arith.constant 0 : index
    %c0_2 = arith.constant 0 : index
    %1 = vector.load %arg2[%c0_1, %c0_2] : memref<400x64xf32, #tpu.memory_space<vmem>>, vector<400x64xf32>
    %cst = arith.constant dense<0.000000e+00> : vector<32x64xf32>
    %2 = tpu.matmul %0, %1, %cst {dimension_numbers = #tpu.dot_dimension_numbers<[1], [0], [0], [1], [0, 0, 1, 1], [], []>} : vector<32x400xf32>, vector<400x64xf32>, vector<32x64xf32> -> vector<32x64xf32>
    %c0_3 = arith.constant 0 : index
    %c0_4 = arith.constant 0 : index
    %3 = vector.load %arg3[%c0_3, %c0_4] : memref<1x64xf32, #tpu.memory_space<vmem>>, vector<1x64xf32>
    %4 = vector.broadcast %3 : vector<1x64xf32> to vector<32x64xf32>
    %5 = arith.addf %2, %4 : vector<32x64xf32>
    %cst_5 = arith.constant 0.000000e+00 : f32
    %6 = vector.broadcast %cst_5 : f32 to vector<32x64xf32>
    %7 = arith.maximumf %5, %6 : vector<32x64xf32>
    %c0_6 = arith.constant 0 : index
    %c0_7 = arith.constant 0 : index
    %8 = vector.load %arg4[%c0_6, %c0_7] : memref<64x60xf32, #tpu.memory_space<vmem>>, vector<64x60xf32>
    %cst_8 = arith.constant dense<0.000000e+00> : vector<32x60xf32>
    %9 = tpu.matmul %7, %8, %cst_8 {dimension_numbers = #tpu.dot_dimension_numbers<[1], [0], [0], [1], [0, 0, 1, 1], [], []>} : vector<32x64xf32>, vector<64x60xf32>, vector<32x60xf32> -> vector<32x60xf32>
    %c0_9 = arith.constant 0 : index
    %c0_10 = arith.constant 0 : index
    %10 = vector.load %arg5[%c0_9, %c0_10] : memref<1x60xf32, #tpu.memory_space<vmem>>, vector<1x60xf32>
    %11 = vector.broadcast %10 : vector<1x60xf32> to vector<32x60xf32>
    %12 = arith.addf %9, %11 : vector<32x60xf32>
    %13 = vector.extract_strided_slice %12 {offsets = [0, 0], sizes = [32, 20], strides = [1, 1]} : vector<32x60xf32> to vector<32x20xf32>
    %14 = vector.extract_strided_slice %12 {offsets = [0, 20], sizes = [32, 20], strides = [1, 1]} : vector<32x60xf32> to vector<32x20xf32>
    %15 = vector.extract_strided_slice %12 {offsets = [0, 40], sizes = [32, 20], strides = [1, 1]} : vector<32x60xf32> to vector<32x20xf32>
    %16 = arith.maximumf %13, %14 : vector<32x20xf32>
    %17 = arith.maximumf %16, %15 : vector<32x20xf32>
    %18 = arith.subf %13, %17 : vector<32x20xf32>
    %19 = math.exp %18 : vector<32x20xf32>
    %20 = arith.subf %14, %17 : vector<32x20xf32>
    %21 = math.exp %20 : vector<32x20xf32>
    %22 = arith.subf %15, %17 : vector<32x20xf32>
    %23 = math.exp %22 : vector<32x20xf32>
    %24 = arith.addf %19, %21 : vector<32x20xf32>
    %25 = arith.addf %24, %23 : vector<32x20xf32>
    %cst_11 = arith.constant 1.000000e+00 : f32
    %26 = vector.broadcast %cst_11 : f32 to vector<32x20xf32>
    %27 = arith.divf %26, %25 : vector<32x20xf32>
    %28 = arith.mulf %19, %27 : vector<32x20xf32>
    %29 = arith.mulf %21, %27 : vector<32x20xf32>
    %30 = arith.mulf %23, %27 : vector<32x20xf32>
    %31 = tpu.concatenate %28, %29, %30 in 1 : vector<32x20xf32>, vector<32x20xf32>, vector<32x20xf32> -> vector<32x60xf32>
    %c0_12 = arith.constant 0 : index
    %c0_13 = arith.constant 0 : index
    %32 = vector.load %arg6[%c0_12, %c0_13] : memref<32x60xf32, #tpu.memory_space<vmem>>, vector<32x60xf32>
    tpu.vector_store %arg6[%c0_12, %c0_13], %31 {strides = array<i32>} : memref<32x60xf32, #tpu.memory_space<vmem>>, vector<32x60xf32>,
    return
  }
  func.func @transform_0(%arg0: i32) -> (i32, i32) {
    %c0_i32 = arith.constant 0 : i32
    %c0_i32_0 = arith.constant 0 : i32
    return %arg0, %c0_i32 : i32, i32
  }
  func.func @transform_1(%arg0: i32) -> (i32, i32) {
    %c0_i32 = arith.constant 0 : i32
    %c0_i32_0 = arith.constant 0 : i32
    %c0_i32_1 = arith.constant 0 : i32
    return %c0_i32, %c0_i32_0 : i32, i32
  }
  func.func @transform_2(%arg0: i32) -> (i32, i32) {
    %c0_i32 = arith.constant 0 : i32
    %c0_i32_0 = arith.constant 0 : i32
    %c0_i32_1 = arith.constant 0 : i32
    return %c0_i32, %c0_i32_0 : i32, i32
  }
  func.func @transform_3(%arg0: i32) -> (i32, i32) {
    %c0_i32 = arith.constant 0 : i32
    %c0_i32_0 = arith.constant 0 : i32
    %c0_i32_1 = arith.constant 0 : i32
    return %c0_i32, %c0_i32_0 : i32, i32
  }
  func.func @transform_4(%arg0: i32) -> (i32, i32) {
    %c0_i32 = arith.constant 0 : i32
    %c0_i32_0 = arith.constant 0 : i32
    %c0_i32_1 = arith.constant 0 : i32
    return %c0_i32, %c0_i32_0 : i32, i32
  }
  func.func @transform_5(%arg0: i32) -> (i32, i32) {
    %c0_i32 = arith.constant 0 : i32
    %c0_i32_0 = arith.constant 0 : i32
    return %arg0, %c0_i32 : i32, i32
  }
}

</mosaic_0001>

<bundles_post_ra>
// kernel: tpu_custom_call.1
= control target key start
LH: loop header
LB: loop body
LE: loop exit
PB: predicated region body
PF: predicated region fallthrough
CT: control target
= control target key end

     0   :  { %10 = vsyncpa [#allocation3], 0  ;;  %s1449_s0 = inlined_call_operand.vmem [shape: f32[64,400], index: 0, kind: input, shape index: {}]   ;;  %s1450_s1 = inlined_call_operand.vmem [shape: f32[400,64], index: 1, kind: input, shape index: {}]   ;;  %s1451_s2 = inlined_call_operand.vmem [shape: f32[1,64], index: 2, kind: input, shape index: {}]   ;;  %s1452_s3 = inlined_call_operand.vmem [shape: f32[64,60], index: 3, kind: input, shape index: {}]   ;;  %s1453_s4 = inlined_call_operand.vmem [shape: f32[1,60], index: 4, kind: input, shape index: {}]   ;;  %s1454_s5 = inlined_call_operand.hbm [shape: f32[64,60], index: 5, kind: output, shape index: {}]  }
   0x1   :  { %12 = vsyncpa [#allocation3 + $0x1], 0  ;;  %s1021_s18 = smov 0   ;;  %s1023_s19 = smov 0  }
   0x2   :  { %s1025_s20 = smov 0   ;;  %s1027_s21 = smov 0  }
   0x3 LB: > { %s1042_s22 = sadd.s32 4294967295, %s983_s21   ;;  %s819_s23 = sadd.s32 4294967294, %s983_s21   ;;  %s983_s21 = sphi %s1027_s21, %s1460_s21   ;;  %s979_s20 = sphi %s1025_s20, %s1459_s20   ;;  %s975_s19 = sphi %s1023_s19, %s1458_s19   ;;  %s971_s18 = sphi %s1021_s18, %s1457_s18  }
   0x4   : > { %s1046_s24 = sadd.s32 1, %s983_s21   ;;  %s135_s25 = sadd.s32 1, %s979_s20 }
   0x5   : > { %s132_s26 = ssub.s32 %s983_s21, %s1046_s24  ;;  %p145_p0 = scmp.ne.s32.totalorder %s979_s20, %s975_s19 }
   0x6   : > { %p133_p1 = scmp.eq.s32.totalorder %s132_s26, 0  ;;  %p146_p2 = scmp.eq.s32.totalorder %s1042_s22, 1 }
   0x7   : > { %p151_p3 = scmp.ne.s32.totalorder %s975_s19, %s971_s18  ;;  %p152_p4 = scmp.eq.s32.totalorder %s819_s23, 1 }
   0x8   : > { %s1057_s27 = scalar_select %p133_p1, %s979_s20, %s135_s25  }
   0x9   : > { %p1059_p5 = por %p146_p2, %p145_p0  ;;  %p1063_p6 = por %p152_p4, %p151_p3 }
   0xa   : > { %p822_p7 = scmp.ge.s32.totalorder %s983_s21, 1  ;;  %p192_p8 = scmp.lt.s32.totalorder %s983_s21, 3 }
   0xc   : > { %p193_p9 = pnand %p822_p7, %p192_p8 }
   0xd   : > { %s824_s30 = sshll.u32 (!%p193_p9), %s1042_s22, 2  ;;  %s985_s6 = smov (!%p193_p9), 88  }
   0xe   : > { %196 = sbr.rel (%p193_p9) target bundleno = 856 (0x358), region = 40  ;;  %p222_p10 = scmp.lt.s32.totalorder (!%p193_p9), %s824_s30, 7 }
   0xf   : > { %s986_s9 = smov (!%p193_p9), 108   ;;  %s987_s10 = smov (!%p193_p9), 40  }
  0x10   : > { %s988_s11 = smov (!%p193_p9), 20   ;;  %s218_s12 = sand.u32 (!%p193_p9), 1, %s975_s19  }
  0x11   : > { %s823_s13 = sshll.u32 (!%p193_p9), %s218_s12, 5  ;;  %s742_s23 = scalar_lea.sflag (!%p193_p9), [#allocation3], %s218_s12 }
  0x12   : > { %s220_s14 = scalar_lea.vmem (!%p193_p9), [#allocation2], %s823_s13 }
  0x13   : > { %v292_v0 = vld [vmem:[%s1450_s1 + $0x178] sm:$0xff]  ;;  %v291_v2 = vld [vmem:[%s1450_s1 + $0x170] sm:$0xff]  ;;  %v290_v5 = vld [vmem:[%s1450_s1 + $0x168] sm:$0xff]  ;;  %s1462_s30 = smov (!%p222_p10, %s824_s30), 7  ;;  %vm299_vm0 = vcmask 130048   ;;  %vm444_vm1 = vcmask 523264  }
  0x14   : > { %v260_v1 = vld [vmem:[%s1450_s1 + $0x78] sm:$0xff]  ;;  %370 = vmatpush.msra.mxu2 %v292_v0  ;;  %v259_v3 = vld [vmem:[%s1450_s1 + $0x70] sm:$0xff]  ;;  %v258_v6 = vld [vmem:[%s1450_s1 + $0x68] sm:$0xff]  ;;  %s840_s8 = sshll.u32 %s1462_s30, 5  ;;  %s754_s17 = sshll.u32 %s220_s14, 4  ;;  %s755_s17 = int_to_ptr.vmem [resolvable:$true] %s754_s17 }
  0x15   : > { %312 = vmatpush.msra.mxu0 %v260_v1  ;;  %v276_v4 = vld [vmem:[%s1450_s1 + $0xf8] sm:$0xff]  ;;  %v275_v7 = vld [vmem:[%s1450_s1 + $0xf0] sm:$0xff]  ;;  %v274_v8 = vld [vmem:[%s1450_s1 + $0xe8] sm:$0xff]  ;;  %s1163_s7 = scalar_lea.vmem %s1449_s0, %s840_s8  ;;  %s841_s8 = sshll.u32 %s1042_s22, 5 }
  0x16   : > { %341 = vmatpush.msra.mxu1 %v276_v4  ;;  %371 = vmatpush.msra.mxu2 %v291_v2  ;;  %v289_v9 = vld [vmem:[%s1450_s1 + $0x160] sm:$0xff]  ;;  %v288_v12 = vld [vmem:[%s1450_s1 + $0x158] sm:$0xff]  ;;  %v287_v15 = vld [vmem:[%s1450_s1 + $0x150] sm:$0xff]  ;;  %s753_s30 = scalar_lea.hbm %s1454_s5, %s841_s8 }
  0x17   : > { %313 = vmatpush.msra.mxu0 %v259_v3  ;;  %v257_v10 = vld [vmem:[%s1450_s1 + $0x60] sm:$0xff]  ;;  %v256_v13 = vld [vmem:[%s1450_s1 + $0x58] sm:$0xff]  ;;  %v255_v16 = vld [vmem:[%s1450_s1 + $0x50] sm:$0xff]  ;;  %s756_s22 = sshll.u32 %s753_s30, 4  ;;  %s757_s22 = int_to_ptr.hbm [resolvable:$true] %s756_s22 }
  0x18   : > { %342 = vmatpush.msra.mxu1 %v275_v7  ;;  %372 = vmatpush.msra.mxu2 %v290_v5  ;;  %v273_v11 = vld [vmem:[%s1450_s1 + $0xe0] sm:$0xff]  ;;  %v272_v14 = vld [vmem:[%s1450_s1 + $0xd8] sm:$0xff]  ;;  %v271_v17 = vld [vmem:[%s1450_s1 + $0xd0] sm:$0xff]  ;;  %s935_s25 = sshra.s32 %s757_s22, 4  ;;  %s936_s25 = int_to_ptr.hbm [resolvable:$true] %s935_s25 }
  0x19   : > { %314 = vmatpush.msra.mxu0 %v258_v6  ;;  %v286_v18 = vld [vmem:[%s1450_s1 + $0x148] sm:$0xff]  ;;  %v285_v21 = vld [vmem:[%s1450_s1 + $0x140] sm:$0xff]  ;;  %v284_v24 = vld [vmem:[%s1450_s1 + $0x138] sm:$0xff]  ;;  %p942_p0 = scmp.lt.s32.totalorder %s936_s25, %s1454_s5 }
  0x1a   : > { %343 = vmatpush.msra.mxu1 %v274_v8  ;;  %373 = vmatpush.msra.mxu2 %v289_v9  ;;  %v254_v19 = vld [vmem:[%s1450_s1 + $0x48] sm:$0xff]  ;;  %v253_v22 = vld [vmem:[%s1450_s1 + $0x40] sm:$0xff]  ;;  %v252_v25 = vld [vmem:[%s1450_s1 + $0x38] sm:$0xff] }
  0x1b   : > { %315 = vmatpush.msra.mxu0 %v257_v10  ;;  %v270_v20 = vld [vmem:[%s1450_s1 + $0xc8] sm:$0xff]  ;;  %v269_v23 = vld [vmem:[%s1450_s1 + $0xc0] sm:$0xff]  ;;  %v268_v26 = vld [vmem:[%s1450_s1 + $0xb8] sm:$0xff] }
  0x1c   : > { %344 = vmatpush.msra.mxu1 %v273_v11  ;;  %374 = vmatpush.msra.mxu2 %v288_v12  ;;  %v294_v27 = vld [vmem:[%s1450_s1 + $0x188] sm:$0xff]  ;;  %v283_v28 = vld [vmem:[%s1450_s1 + $0x130] sm:$0xff]  ;;  %v293_v30 = vld [vmem:[%s1450_s1 + $0x180] sm:$0xff] }
  0x1d   : > { %316 = vmatpush.msra.mxu0 %v256_v13  ;;  %v251_v29 = vld [vmem:[%s1450_s1 + $0x30] sm:$0xff]  ;;  %413 = vmatpush.msra.mxu3 %v294_v27  ;;  %v232_v32 = vld [vmem:[%s1163_s7 + $0x18] sm:$0xff]  ;;  %v282_v33 = vld [vmem:[%s1450_s1 + $0x128] sm:$0xff] }
  0x1e   : > { %345 = vmatpush.msra.mxu1 %v272_v14  ;;  %375 = vmatpush.msra.mxu2 %v287_v15  ;;  %v267_v31 = vld [vmem:[%s1450_s1 + $0xb0] sm:$0xff]  ;;  %v250_v34 = vld [vmem:[%s1450_s1 + $0x28] sm:$0xff]  ;;  %v281_v36 = vld [vmem:[%s1450_s1 + $0x120] sm:$0xff] }
  0x1f   : > { %317 = vmatpush.msra.mxu0 %v255_v16  ;;  %414 = vmatpush.msra.mxu3 %v293_v30  ;;  %v266_v35 = vld [vmem:[%s1450_s1 + $0xa8] sm:$0xff]  ;;  %v249_v37 = vld [vmem:[%s1450_s1 + $0x20] sm:$0xff]  ;;  %v280_v39 = vld [vmem:[%s1450_s1 + $0x118] sm:$0xff] }
  0x20   : > { %346 = vmatpush.msra.mxu1 %v271_v17  ;;  %376 = vmatpush.msra.mxu2 %v286_v18  ;;  %v265_v38 = vld [vmem:[%s1450_s1 + $0xa0] sm:$0xff]  ;;  %v248_v40 = vld [vmem:[%s1450_s1 + $0x18] sm:$0xff]  ;;  %v279_v42 = vld [vmem:[%s1450_s1 + $0x110] sm:$0xff] }
  0x21   : > { %318 = vmatpush.msra.mxu0 %v254_v19  ;;  %827 = vmatmul.msk.f32.vlgmr.msra.gmra.mxu3 %vm299_vm0, %v232_v32  ;;  %v264_v41 = vld [vmem:[%s1450_s1 + $0x98] sm:$0xff]  ;;  %v247_v43 = vld [vmem:[%s1450_s1 + $0x10] sm:$0xff]  ;;  %v278_v46 = vld [vmem:[%s1450_s1 + $0x108] sm:$0xff] }
  0x22   : > { %347 = vmatpush.msra.mxu1 %v270_v20  ;;  %377 = vmatpush.msra.mxu2 %v285_v21  ;;  %v263_v44 = vld [vmem:[%s1450_s1 + $0x90] sm:$0xff]  ;;  %v236_v45 = vld [vmem:[%s1163_s7 + $0x38] sm:$0xff]  ;;  %v246_v47 = vld [vmem:[%s1450_s1 + $0x8] sm:$0xff] }
  0x23   : > { %319 = vmatpush.msra.mxu0 %v253_v22  ;;  %v262_v48 = vld [vmem:[%s1450_s1 + $0x88] sm:$0xff]  ;;  %v439_v49 = vld [vmem:[%s1452_s3 + $0x38] sm:$0xff]  ;;  %v277_v50 = vld [vmem:[%s1450_s1 + $0x100] sm:$0xff] }
  0x24   : > { %348 = vmatpush.msra.mxu1 %v269_v23  ;;  %378 = vmatpush.msra.mxu2 %v284_v24  ;;  %v245_v51 = vld [vmem:[%s1450_s1] sm:$0xff]  ;;  %v231_v52 = vld [vmem:[%s1163_s7 + $0x10] sm:$0xff]  ;;  %v230_v56 = vld [vmem:[%s1163_s7 + $0x8] sm:$0xff] }
  0x25   : > { %320 = vmatpush.msra.mxu0 %v252_v25  ;;  %v229_v53 = vld [vmem:[%s1163_s7] sm:$0xff]  ;;  %465 = vmatpush.msrb.mxu3 %v439_v49  ;;  %v438_v55 = vld [vmem:[%s1452_s3 + $0x30] sm:$0xff]  ;;  %v437_v57 = vld [vmem:[%s1452_s3 + $0x28] sm:$0xff] }
  0x26   : > { %349 = vmatpush.msra.mxu1 %v268_v26  ;;  %379 = vmatpush.msra.mxu2 %v283_v28  ;;  %v261_v54 = vld [vmem:[%s1450_s1 + $0x80] sm:$0xff]  ;;  %v240_v58 = vld [vmem:[%s1163_s7 + $0x58] sm:$0xff]  ;;  %v235_v61 = vld [vmem:[%s1163_s7 + $0x30] sm:$0xff] }
  0x27   : > { %321 = vmatpush.msra.mxu0 %v251_v29  ;;  %466 = vmatpush.msrb.mxu3 %v438_v55  ;;  %v436_v59 = vld [vmem:[%s1452_s3 + $0x20] sm:$0xff]  ;;  %v435_v60 = vld [vmem:[%s1452_s3 + $0x18] sm:$0xff]  ;;  %v434_v63 = vld [vmem:[%s1452_s3 + $0x10] sm:$0xff] }
  0x28   : > { %350 = vmatpush.msra.mxu1 %v267_v31  ;;  %380 = vmatpush.msra.mxu2 %v282_v33  ;;  %v233_v62 = vld [vmem:[%s1163_s7 + $0x20] sm:$0xff]  ;;  %v234_v0 = vld [vmem:[%s1163_s7 + $0x28] sm:$0xff]  ;;  %v244_v1 = vld [vmem:[%s1163_s7 + $0x78] sm:$0xff] }
  0x29   : > { %322 = vmatpush.msra.mxu0 %v250_v34  ;;  %828 = vmatmul.msk.f32.gmra.mxu3 %vm299_vm0, %v236_v45  ;;  %v239_v2 = vld [vmem:[%s1163_s7 + $0x50] sm:$0xff]  ;;  %v237_v3 = vld [vmem:[%s1163_s7 + $0x40] sm:$0xff]  ;;  %v238_v4 = vld [vmem:[%s1163_s7 + $0x48] sm:$0xff] }
  0x2a   : > { %351 = vmatpush.msra.mxu1 %v266_v35  ;;  %381 = vmatpush.msra.mxu2 %v281_v36  ;;  %v243_v5 = vld [vmem:[%s1163_s7 + $0x70] sm:$0xff]  ;;  %v241_v6 = vld [vmem:[%s1163_s7 + $0x60] sm:$0xff]  ;;  %v242_v7 = vld [vmem:[%s1163_s7 + $0x68] sm:$0xff]  ;;  %s937_s7 = scalar_lea.hbm %s936_s25, 32 }
  0x2b   : > { %323 = vmatpush.msra.mxu0 %v249_v37  ;;  %467 = vmatpush.msrb.mxu3 %v437_v57  ;;  %v433_v8 = vld [vmem:[%s1452_s3 + $0x8] sm:$0xff]  ;;  %v432_v9 = vld [vmem:[%s1452_s3] sm:$0xff]  ;;  %p938_p11 = scmp.ne.s32.totalorder %s936_s25, %s937_s7 }
  0x2c   : > { %352 = vmatpush.msra.mxu1 %v265_v38  ;;  %382 = vmatpush.msra.mxu2 %v280_v39  ;;  %v887_v10 = vld [vmem:[%s1451_s2] ss:$0 sm:$0xff] }
  0x2d   : > { %324 = vmatpush.msra.mxu0 %v248_v40  ;;  %468 = vmatpush.msrb.mxu3 %v436_v59  ;;  %p939_p12 = pnand %p938_p11, %p1059_p5 }
  0x2e   : > { %353 = vmatpush.msra.mxu1 %v264_v41  ;;  %383 = vmatpush.msra.mxu2 %v279_v42 }
  0x2f   : > { %325 = vmatpush.msra.mxu0 %v247_v43  ;;  %469 = vmatpush.msrb.mxu3 %v435_v60  ;;  %p940_p13 = pneg %p939_p12 }
  0x30   : > { %354 = vmatpush.msra.mxu1 %v263_v44  ;;  %384 = vmatpush.msra.mxu2 %v278_v46 }
  0x31   : > { %326 = vmatpush.msra.mxu0 %v246_v47  ;;  %829 = vmatmul.msk.f32.gmra.mxu3 %vm299_vm0, %v240_v58  ;;  %v888_v47 = vld [vmem:[%s1453_s4] ss:$0 sm:$0xff] }
  0x32   : > { %355 = vmatpush.msra.mxu1 %v262_v48  ;;  %385 = vmatpush.msra.mxu2 %v277_v50 }
  0x33   : > { %327 = vmatpush.msra.mxu0 %v245_v51  ;;  %386 = vmatmul.f32.vlgmr.msra.gmra.mxu2 %v231_v52 }
  0x34   : > { %328 = vmatmul.f32.vlgmr.msra.gmra.mxu0 %v229_v53  ;;  %356 = vmatpush.msra.mxu1 %v261_v54 }
  0x35   : > { %357 = vmatmul.f32.vlgmr.msra.gmra.mxu1 %v230_v56  ;;  %470 = vmatpush.msrb.mxu3 %v434_v63 }
  0x37   : > { %471 = vmatpush.msrb.mxu3 %v433_v8 }
  0x39   : > { %830 = vmatmul.msk.f32.gmra.mxu3 %vm299_vm0, %v244_v1 }
  0x3a   : > { %472 = vmatpush.msrb.mxu3 %v432_v9 }
  0x3b   : > { %389 = vmatmul.f32.gmra.mxu2 %v235_v61 }
  0x3c   : > { %331 = vmatmul.f32.gmra.mxu0 %v233_v62 }
  0x3d   : > { %360 = vmatmul.f32.gmra.mxu1 %v234_v0 }
  0x43   : > { %392 = vmatmul.f32.gmra.mxu2 %v239_v2 }
  0x44   : > { %334 = vmatmul.f32.gmra.mxu0 %v237_v3 }
  0x45   : > { %363 = vmatmul.f32.gmra.mxu1 %v238_v4 }
  0x4b   : > { %395 = vmatmul.f32.gmra.mxu2 %v243_v5 }
  0x4c   : > { %337 = vmatmul.f32.gmra.mxu0 %v241_v6 }
  0x4d   : > { %366 = vmatmul.f32.gmra.mxu1 %v242_v7 }
  0xa4   : > { %v416_v12 = vpop.f32.mrf.mxu3 }
  0xac   : > { %v419_v22 = vpop.f32.mrf.mxu3 }
  0xb1   : > { %v329_v11 = vpop.f32.mrf.mxu0 }
  0xb2   : > { %v330_v13 = vadd.f32 %v887_v10, %v329_v11  ;;  %v358_v14 = vpop.f32.mrf.mxu1 }
  0xb4   : > { %v359_v15 = vadd.f32 %v358_v14, %v330_v13  ;;  %v422_v33 = vpop.f32.mrf.mxu3 }
  0xb6   : > { %v387_v16 = vpop.f32.mrf.mxu2 }
  0xb7   : > { %v388_v17 = vadd.f32 %v387_v16, %v359_v15 }
  0xb9   : > { %v332_v18 = vpop.f32.mrf.mxu0  ;;  %v417_v19 = vadd.f32 %v416_v12, %v388_v17 }
  0xba   : > { %v333_v20 = vadd.f32 %v887_v10, %v332_v18  ;;  %v361_v21 = vpop.f32.mrf.mxu1 }
  0xbb   : > { %v428_v23 = vmax.f32 %v417_v19, 0.0 }
  0xbc   : > { %v362_v24 = vadd.f32 %v361_v21, %v333_v20  ;;  %v425_v43 = vpop.f32.mrf.mxu3 }
  0xbd   : > { %831 = vmatmul.msk.f32.vlgmr.msrb.gmra.mxu3 %vm444_vm1, %v428_v23 }
  0xbe   : > { %v390_v25 = vpop.f32.mrf.mxu2 }
  0xbf   : > { %v391_v26 = vadd.f32 %v390_v25, %v362_v24 }
  0xc1   : > { %v335_v27 = vpop.f32.mrf.mxu0  ;;  %v420_v28 = vadd.f32 %v419_v22, %v391_v26 }
  0xc2   : > { %v336_v29 = vadd.f32 %v887_v10, %v335_v27  ;;  %v364_v30 = vpop.f32.mrf.mxu1 }
  0xc3   : > { %v429_v31 = vmax.f32 %v420_v28, 0.0 }
  0xc4   : > { %v365_v32 = vadd.f32 %v364_v30, %v336_v29 }
  0xc5   : > { %832 = vmatmul.msk.f32.gmra.mxu3 %vm444_vm1, %v429_v31 }
  0xc6   : > { %v393_v34 = vpop.f32.mrf.mxu2 }
  0xc7   : > { %v394_v35 = vadd.f32 %v393_v34, %v365_v32 }
  0xc9   : > { %v338_v36 = vpop.f32.mrf.mxu0  ;;  %v423_v37 = vadd.f32 %v422_v33, %v394_v35 }
  0xca   : > { %v339_v38 = vadd.f32 %v887_v10, %v338_v36  ;;  %v367_v39 = vpop.f32.mrf.mxu1 }
  0xcb   : > { %v430_v40 = vmax.f32 %v423_v37, 0.0 }
  0xcc   : > { %v368_v41 = vadd.f32 %v367_v39, %v339_v38 }
  0xcd   : > { %833 = vmatmul.msk.f32.gmra.mxu3 %vm444_vm1, %v430_v40 }
  0xce   : > { %v396_v42 = vpop.f32.mrf.mxu2 }
  0xcf   : > { %v397_v44 = vadd.f32 %v396_v42, %v368_v41 }
  0xd1   : > { %v426_v45 = vadd.f32 %v425_v43, %v397_v44 }
  0xd3   : > { %v431_v46 = vmax.f32 %v426_v45, 0.0 }
  0xd5   : > { %834 = vmatmul.msk.f32.gmra.mxu3 %vm444_vm1, %v431_v46 }
 0x140   : > { %v474_v48 = vpop.f32.mrf.mxu3 }
 0x141   : > { %v1279_v49 = vadd.f32 %v888_v47, %v474_v48 }
 0x143   : > { %506 = vrot.lane.b32.xlu2 %v1279_v49, %s985_s6  ;;  %490 = vrot.lane.b32.xlu0 %v1279_v49, %s986_s9 }
 0x148   : > { %v477_v50 = vpop.f32.mrf.mxu3 }
 0x149   : > { %v1285_v51 = vadd.f32 %v888_v47, %v477_v50 }
 0x14b   : > { %508 = vrot.lane.b32.xlu2 %v1285_v51, %s985_s6  ;;  %492 = vrot.lane.b32.xlu0 %v1285_v51, %s986_s9 }
 0x150   : > { %v480_v52 = vpop.f32.mrf.mxu3 }
 0x151   : > { %v1291_v53 = vadd.f32 %v888_v47, %v480_v52 }
 0x153   : > { %494 = vrot.lane.b32.xlu1 %v1291_v53, %s986_s9  ;;  %510 = vrot.lane.b32.xlu0 %v1291_v53, %s985_s6 }
 0x158   : > { %v483_v54 = vpop.f32.mrf.mxu3 }
 0x159   : > { %v1297_v55 = vadd.f32 %v888_v47, %v483_v54 }
 0x15b   : > { %496 = vrot.lane.b32.xlu1 %v1297_v55, %s986_s9 }
 0x163   : > { %512 = vrot.lane.b32.xlu1 %v1297_v55, %s985_s6 }
 0x19d   : > { %v507_v56 = vpop.permute.xlu2 %506 }
 0x1a5   : > { %v509_v62 = vpop.permute.xlu2 %508 }
 0x1b5   : > { %v491_v57 = vpop.permute.xlu0 %490 }
 0x1b6   : > { %v502_v58 = vmax.f32 %v1279_v49, %v491_v57 }
 0x1b8   : > { %v1304_v59 = vmax.f32 %v502_v58, %v507_v56 }
 0x1ba   : > { %562 = vrot.lane.b32.xlu0 %v1304_v59, %s987_s10  ;;  %538 = vrot.lane.b32.xlu2 %v1304_v59, %s988_s11  ;;  %v522_v40 = vsub.f32 %v1279_v49, %v1304_v59 }
 0x1bc   : > { %v526_v41 = vmul.f32 1.442695, %v522_v40 }
 0x1bd   : > { %v493_v60 = vpop.permute.xlu0 %492 }
 0x1be   : > { %v503_v61 = vmax.f32 %v1285_v51, %v493_v60 }
 0x1c0   : > { %v1311_v63 = vmax.f32 %v503_v61, %v509_v62 }
 0x1c2   : > { %540 = vrot.lane.b32.xlu0 %v1311_v63, %s988_s11 }
 0x1c5   : > { %v495_v0 = vpop.permute.xlu1 %494  ;;  %v511_v2 = vpop.permute.xlu0 %510 }
 0x1c6   : > { %v504_v1 = vmax.f32 %v1291_v53, %v495_v0 }
 0x1c8   : > { %v1316_v3 = vmax.f32 %v504_v1, %v511_v2 }
 0x1ca   : > { %542 = vrot.lane.b32.xlu1 %v1316_v3, %s988_s11 }
 0x1cd   : > { %v497_v4 = vpop.permute.xlu1 %496 }
 0x1ce   : > { %v505_v5 = vmax.f32 %v1297_v55, %v497_v4 }
 0x1d2   : > { %564 = vrot.lane.b32.xlu1 %v1311_v63, %s987_s10 }
 0x1d5   : > { %v513_v6 = vpop.permute.xlu1 %512 }
 0x1d6   : > { %v1323_v7 = vmax.f32 %v505_v5, %v513_v6  ;;  %v523_v6 = vsub.f32 %v1285_v51, %v1311_v63 }
 0x1d8   : > { %544 = vrot.lane.b32.xlu2 %v1323_v7, %s988_s11  ;;  %568 = vrot.lane.b32.xlu0 %v1323_v7, %s987_s10  ;;  %v525_v54 = vsub.f32 %v1297_v55, %v1323_v7 }
 0x1da   : > { %v532_v59 = vmul.f32 1.442695, %v525_v54 }
 0x1e0   : > { %566 = vrot.lane.b32.xlu2 %v1316_v3, %s987_s10 }
 0x214   : > { %v539_v8 = vpop.permute.xlu2 %538 }
 0x215   : > { %v550_v9 = vsub.f32 %v1279_v49, %v539_v8 }
 0x217   : > { %v554_v10 = vmul.f32 1.442695, %v550_v9  ;;  %v528_v9 = vmul.f32 1.442695, %v523_v6 }
 0x219   : > { %889 = vpow2.f32 %v554_v10 }
 0x21f   : > { %v1332_v11 = vpop.eup %889 }
 0x220   : > { %590 = vrot.lane.b32.xlu1 %v1332_v11, %s986_s9 }
 0x22c   : > { %v563_v12 = vpop.permute.xlu0 %562 }
 0x22d   : > { %v574_v13 = vsub.f32 %v1279_v49, %v563_v12 }
 0x22f   : > { %v578_v14 = vmul.f32 1.442695, %v574_v13 }
 0x231   : > { %891 = vpow2.f32 %v578_v14 }
 0x232   : > { %v545_v15 = vpop.permute.xlu2 %544 }
 0x233   : > { %v553_v16 = vsub.f32 %v1297_v55, %v545_v15 }
 0x234   : > { %v541_v17 = vpop.permute.xlu0 %540 }
 0x235   : > { %v560_v18 = vmul.f32 1.442695, %v553_v16  ;;  %v551_v19 = vsub.f32 %v1285_v51, %v541_v17 }
 0x237   : > { %v1339_v20 = vpop.eup %891  ;;  %893 = vpow2.f32 %v560_v18  ;;  %v556_v21 = vmul.f32 1.442695, %v551_v19 }
 0x238   : > { %610 = vrot.lane.b32.xlu2 %v1339_v20, %s985_s6 }
 0x239   : > { %895 = vpow2.f32 %v556_v21 }
 0x23a   : > { %v567_v22 = vpop.permute.xlu2 %566 }
 0x23b   : > { %v576_v23 = vsub.f32 %v1291_v53, %v567_v22 }
 0x23c   : > { %v543_v24 = vpop.permute.xlu1 %542 }
 0x23d   : > { %v1344_v25 = vpop.eup %893  ;;  %v582_v26 = vmul.f32 1.442695, %v576_v23  ;;  %v552_v27 = vsub.f32 %v1291_v53, %v543_v24 }
 0x23e   : > { %596 = vrot.lane.b32.xlu1 %v1344_v25, %s986_s9 }
 0x23f   : > { %v1349_v28 = vpop.eup %895  ;;  %897 = vpow2.f32 %v582_v26  ;;  %v558_v29 = vmul.f32 1.442695, %v552_v27 }
 0x240   : > { %592 = vrot.lane.b32.xlu2 %v1349_v28, %s986_s9 }
 0x241   : > { %899 = vpow2.f32 %v558_v29 }
 0x244   : > { %v565_v30 = vpop.permute.xlu1 %564 }
 0x245   : > { %v1353_v31 = vpop.eup %897  ;;  %v575_v32 = vsub.f32 %v1285_v51, %v565_v30 }
 0x246   : > { %614 = vrot.lane.b32.xlu1 %v1353_v31, %s985_s6 }
 0x247   : > { %v1358_v33 = vpop.eup %899  ;;  %v580_v34 = vmul.f32 1.442695, %v575_v32 }
 0x248   : > { %594 = vrot.lane.b32.xlu0 %v1358_v33, %s986_s9  ;;  %s941_s9 = scalar_lea.hbm %s1454_s5, 64 }
 0x249   : > { %901 = vpow2.f32 %v580_v34  ;;  %p943_p1 = scmp.lt.s32.totalorder %s941_s9, %s937_s7 }
 0x24a   : > { %v569_v35 = vpop.permute.xlu0 %568 }
 0x24b   : > { %v577_v36 = vsub.f32 %v1297_v55, %v569_v35  ;;  %v524_v55 = vsub.f32 %v1291_v53, %v1316_v3  ;;  %p944_p2 = por %p943_p1, %p942_p0 }
 0x24d   : > { %v584_v37 = vmul.f32 1.442695, %v577_v36  ;;  %v530_v2 = vmul.f32 1.442695, %v524_v55  ;;  %p945_p3 = pnand %p944_p2, %p940_p13 }
 0x24f   : > { %v1363_v38 = vpop.eup %901  ;;  %903 = vpow2.f32 %v584_v37 }
 0x250   : > { %612 = vrot.lane.b32.xlu0 %v1363_v38, %s985_s6  ;;  %905 = vpow2.f32 %v526_v41 }
 0x255   : > { %v1367_v39 = vpop.eup %903 }
 0x256   : > { %616 = vrot.lane.b32.xlu2 %v1367_v39, %s985_s6  ;;  %v906_v42 = vpop.eup %905 }
 0x292   : > { %v591_v43 = vpop.permute.xlu1 %590  ;;  %v611_v45 = vpop.permute.xlu2 %610 }
 0x293   : > { %v602_v44 = vadd.f32 %v906_v42, %v591_v43 }
 0x295   : > { %v622_v46 = vadd.f32 %v611_v45, %v602_v44 }
 0x297   : > { %907 = vrcp.f32 %v622_v46  ;;  %v637_v52 = vand.u32 2147483648, %v622_v46  ;;  %v635_v57 = vand.u32 2147483647, %v622_v46  ;;  %vm631_vm3 = vweird.f32 %v622_v46 }
 0x298   : > { %909 = vpow2.f32 %v532_v59 }
 0x299   : > { %v638_v49 = vor.u32 1.1754944e-38, %v637_v52  ;;  %vm636_vm5 = vcmp.eq.f32.partialorder %v635_v57, 8.507059e+37  ;;  %911 = vpow2.f32 %v530_v2 }
 0x29a   : > { %v593_v0 = vpop.permute.xlu2 %592 }
 0x29d   : > { %v908_v47 = vpop.eup %907 }
 0x29e   : > { %v627_v48 = vmul.f32 %v908_v47, %v622_v46  ;;  %vm632_vm2 = vweird.f32 %v908_v47  ;;  %v910_v1 = vpop.eup %909 }
 0x29f   : > { %vm633_vm4 = vmor %vm631_vm3, %vm632_vm2  ;;  %v912_v10 = vpop.eup %911  ;;  %vm726_vm2 = vcmask 162816   ;;  %vm731_vm3 = vcmask 326656  }
 0x2a0   : > { %v628_v50 = vsub.f32 1.0, %v627_v48 }
 0x2a2   : > { %v629_v56 = vmul.f32 %v908_v47, %v628_v50 }
 0x2a4   : > { %v630_v58 = vadd.f32 %v908_v47, %v629_v56 }
 0x2a6   : > { %v634_v60 = vsel %vm633_vm4, %v908_v47, %v630_v58  ;;  %vm736_vm4 = vcmask 490496  }
 0x2a7   : > { %v639_v61 = vsel %vm636_vm5, %v638_v49, %v634_v60 }
 0x2a8   : > { %710 = vrot.lane.b32.xlu1 %v639_v61, %s987_s10  ;;  %v1376_v62 = vmul.f32 %v906_v42, %v639_v61  ;;  %694 = vrot.lane.b32.xlu0 %v639_v61, %s988_s11 }
 0x2b0   : > { %v597_v4 = vpop.permute.xlu1 %596  ;;  %v617_v7 = vpop.permute.xlu2 %616 }
 0x2b1   : > { %v605_v5 = vadd.f32 %v910_v1, %v597_v4 }
 0x2b3   : > { %v625_v8 = vadd.f32 %v617_v7, %v605_v5 }
 0x2b5   : > { %913 = vrcp.f32 %v625_v8  ;;  %v682_v17 = vand.u32 2147483648, %v625_v8  ;;  %v680_v51 = vand.u32 2147483647, %v625_v8  ;;  %vm676_vm7 = vweird.f32 %v625_v8 }
 0x2b6   : > { %915 = vpow2.f32 %v528_v9 }
 0x2b7   : > { %v683_v24 = vor.u32 1.1754944e-38, %v682_v17  ;;  %vm681_vm9 = vcmp.eq.f32.partialorder %v680_v51, 8.507059e+37 }
 0x2b8   : > { %v615_v15 = vpop.permute.xlu1 %614 }
 0x2ba   : > { %v595_v12 = vpop.permute.xlu0 %594 }
 0x2bb   : > { %v914_v13 = vpop.eup %913  ;;  %v604_v14 = vadd.f32 %v912_v10, %v595_v12 }
 0x2bc   : > { %v672_v16 = vmul.f32 %v914_v13, %v625_v8  ;;  %v916_v18 = vpop.eup %915  ;;  %vm677_vm6 = vweird.f32 %v914_v13 }
 0x2bd   : > { %v624_v53 = vadd.f32 %v615_v15, %v604_v14  ;;  %v603_v63 = vadd.f32 %v916_v18, %v593_v0  ;;  %vm678_vm8 = vmor %vm676_vm7, %vm677_vm6 }
 0x2be   : > { %v673_v3 = vsub.f32 1.0, %v672_v16 }
 0x2bf   : > { %917 = vrcp.f32 %v624_v53  ;;  %v667_v35 = vand.u32 2147483648, %v624_v53  ;;  %v665_v37 = vand.u32 2147483647, %v624_v53  ;;  %vm661_vm11 = vweird.f32 %v624_v53 }
 0x2c0   : > { %v674_v19 = vmul.f32 %v914_v13, %v673_v3 }
 0x2c1   : > { %v668_v43 = vor.u32 1.1754944e-38, %v667_v35  ;;  %vm666_vm13 = vcmp.eq.f32.partialorder %v665_v37, 8.507059e+37 }
 0x2c2   : > { %v613_v21 = vpop.permute.xlu0 %612  ;;  %v675_v22 = vadd.f32 %v914_v13, %v674_v19 }
 0x2c3   : > { %v623_v23 = vadd.f32 %v613_v21, %v603_v63 }
 0x2c4   : > { %v679_v26 = vsel %vm678_vm8, %v914_v13, %v675_v22 }
 0x2c5   : > { %v918_v27 = vpop.eup %917  ;;  %919 = vrcp.f32 %v623_v23  ;;  %v684_v29 = vsel %vm681_vm9, %v683_v24, %v679_v26  ;;  %v652_v47 = vand.u32 2147483648, %v623_v23  ;;  %v650_v52 = vand.u32 2147483647, %v623_v23 }
 0x2c6   : > { %700 = vrot.lane.b32.xlu0 %v684_v29, %s988_s11  ;;  %v1384_v30 = vmul.f32 %v910_v1, %v684_v29  ;;  %v657_v32 = vmul.f32 %v918_v27, %v624_v53  ;;  %vm662_vm10 = vweird.f32 %v918_v27  ;;  %vm646_vm15 = vweird.f32 %v623_v23 }
 0x2c7   : > { %vm663_vm12 = vmor %vm661_vm11, %vm662_vm10  ;;  %v653_v56 = vor.u32 1.1754944e-38, %v652_v47  ;;  %vm651_vm1 = vcmp.eq.f32.partialorder %v650_v52, 8.507059e+37 }
 0x2c8   : > { %v658_v34 = vsub.f32 1.0, %v657_v32 }
 0x2ca   : > { %v659_v36 = vmul.f32 %v918_v27, %v658_v34 }
 0x2cb   : > { %v920_v40 = vpop.eup %919 }
 0x2cc   : > { %v660_v41 = vadd.f32 %v918_v27, %v659_v36  ;;  %v642_v42 = vmul.f32 %v920_v40, %v623_v23  ;;  %vm647_vm14 = vweird.f32 %v920_v40 }
 0x2cd   : > { %vm648_vm0 = vmor %vm646_vm15, %vm647_vm14 }
 0x2ce   : > { %v664_v44 = vsel %vm663_vm12, %v918_v27, %v660_v41  ;;  %v643_v45 = vsub.f32 1.0, %v642_v42 }
 0x2cf   : > { %v669_v46 = vsel %vm666_vm13, %v668_v43, %v664_v44 }
 0x2d0   : > { %714 = vrot.lane.b32.xlu0 %v669_v46, %s987_s10  ;;  %v688_v48 = vmul.f32 %v912_v10, %v669_v46  ;;  %698 = vrot.lane.b32.xlu2 %v669_v46, %s988_s11  ;;  %v644_v50 = vmul.f32 %v920_v40, %v643_v45 }
 0x2d2   : > { %v645_v54 = vadd.f32 %v920_v40, %v644_v50 }
 0x2d4   : > { %v649_v57 = vsel %vm648_vm0, %v920_v40, %v645_v54 }
 0x2d5   : > { %v654_v58 = vsel %vm651_vm1, %v653_v56, %v649_v57 }
 0x2d6   : > { %696 = vrot.lane.b32.xlu1 %v654_v58, %s988_s11  ;;  %v687_v49 = vmul.f32 %v916_v18, %v654_v58 }
 0x2d8   : > { %712 = vrot.lane.b32.xlu2 %v654_v58, %s987_s10 }
 0x2de   : > { %716 = vrot.lane.b32.xlu1 %v684_v29, %s987_s10 }
 0x31a   : > { %v711_v59 = vpop.permute.xlu1 %710  ;;  %v695_v60 = vpop.permute.xlu0 %694 }
 0x31b   : > { %v722_v61 = vmul.f32 %v1339_v20, %v711_v59  ;;  %v706_v0 = vmul.f32 %v1332_v11, %v695_v60 }
 0x31d   : > { %v727_v55 = vsel %vm726_vm2, %v1376_v62, %v706_v0 }
 0x31e   : > { %v732_v1 = vsel %vm731_vm3, %v727_v55, %v722_v61 }
 0x31f   : > { %737 = vst.msk [vmem:[%s220_s14] sm:$0xff] %vm736_vm4, %v732_v1 }
 0x32a   : > { %v699_v4 = vpop.permute.xlu2 %698 }
 0x32b   : > { %v708_v5 = vmul.f32 %v1358_v33, %v699_v4 }
 0x32d   : > { %v729_v7 = vsel %vm726_vm2, %v688_v48, %v708_v5 }
 0x332   : > { %v713_v8 = vpop.permute.xlu2 %712 }
 0x333   : > { %v723_v10 = vmul.f32 %v1363_v38, %v713_v8 }
 0x338   : > { %v701_v2 = vpop.permute.xlu0 %700 }
 0x339   : > { %v709_v33 = vmul.f32 %v1344_v25, %v701_v2 }
 0x33b   : > { %v730_v38 = vsel %vm726_vm2, %v1384_v30, %v709_v33 }
 0x342   : > { %v715_v6 = vpop.permute.xlu0 %714 }
 0x343   : > { %v724_v20 = vmul.f32 %v1353_v31, %v715_v6 }
 0x345   : > { %v734_v11 = vsel %vm731_vm3, %v729_v7, %v724_v20 }
 0x346   : > { %739 = vst.msk [vmem:[%s220_s14 + $0x10] sm:$0xff] %vm736_vm4, %v734_v11 }
 0x348   : > { %v697_v62 = vpop.permute.xlu1 %696 }
 0x349   : > { %v707_v9 = vmul.f32 %v1349_v28, %v697_v62 }
 0x34b   : > { %v728_v12 = vsel %vm726_vm2, %v687_v49, %v707_v9 }
 0x34c   : > { %v733_v31 = vsel %vm731_vm3, %v728_v12, %v723_v10 }
 0x34d   : > { %738 = vst.msk [vmem:[%s220_s14 + $0x8] sm:$0xff] %vm736_vm4, %v733_v31 }
 0x350   : > { %v717_v13 = vpop.permute.xlu1 %716 }
 0x351   : > { %v725_v28 = vmul.f32 %v1367_v39, %v717_v13 }
 0x353   : > { %v735_v14 = vsel %vm731_vm3, %v730_v38, %v725_v28 }
 0x354   : > { %740 = vst.msk [vmem:[%s220_s14 + $0x18] sm:$0xff] %vm736_vm4, %v735_v14 }
 0x355   : > { %948 = shalt.err (!%p945_p3)
}
 0x356   : > { %s989_s12 = smov 128   ;;  %s990_s13 = smov 8  }
 0x357   : > { %842 = dma.vmem_to_hbm [thread:$0]  (%p1059_p5), %s755_s17, 512, %s757_s22, %s742_s23, %s989_s12, %s989_s12, %s990_s13  }
 0x358 PF: > { %p848_p4 = scmp.ge.s32.totalorder %s983_s21, 2  ;;  %s771_s14 = sand.u32 1, %s971_s18  }
 0x359   : > { %s772_s8 = scalar_lea.sflag [#allocation3], %s771_s14 }
 0x35a   : > { %p845_p7 = pnand %p848_p4, %p1063_p6 }
 0x35c   : > { %p846_p8 = pneg %p845_p7 }
 0x35e   : > { %966 = dma.done.wait (%p846_p8), %s772_s8, 512  }
 0x35f   : > { %968 = vsyncadd (%p846_p8), %s772_s8, 4294966784  ;;  %p15_p9 = scmp.ge.s32.totalorder %s1046_s24, 4   ;;  %s1457_s18 = smov %s975_s19 }
 0x360   : > { %s1458_s19 = smov %s979_s20  ;;  %s1459_s20 = smov %s1057_s27 }
 0x361   : > { %s1460_s21 = smov %s1046_s24  ;;  %17 = sbr.rel (!%p15_p9) target bundleno = 3 (0x3), region = 75 }
 0x366   :  { %778 = vsyncpa [#allocation3], 1 }
 0x367   :  { %780 = vsyncpa [#allocation3 + $0x1], 1 }

</bundles_post_ra>
